<compile_context>
chip_gen: v7x
topology: tpu7x:2x2x1
jax: 0.10.0
libtpu: 0.0.40
codegen_flags: <defaults>
</compile_context>

<pallas_src>
import functools
import math

import jax
import jax.numpy as jnp
from jax import lax
from jax.experimental import pallas as pl
from jax.experimental.pallas import tpu as pltpu

NEG_INF = -1e30
LOG2_E = 1.4426950408889634


def _flash_fwd_kernel(q_ref, k_ref, v_ref, o_ref, *,
                      scale_log2e, causal, tq, tk, kv_len):
    # grid = (B*H, num_q_tiles); the kv reduction runs inside the kernel over
    # the VMEM-resident whole-sequence K/V blocks.
    qi = pl.program_id(1)
    q = q_ref[0]                                   # (tq, D), input dtype (bf16)
    D = q.shape[-1]
    num_kv = kv_len // tk

    def step(ki, carry, mask_fn):
        m_prev, l_prev, acc_prev = carry
        start = pl.multiple_of(ki * tk, tk)
        k = k_ref[0, pl.ds(start, tk), :]          # (tk, D)
        v = v_ref[0, pl.ds(start, tk), :]          # (tk, D)

        # bf16 x bf16 -> f32 on the MXU, contracting the D dims (no k.T
        # materialized).  Scores are kept in the log2 domain: scale_log2e
        # already folds 1/sqrt(D) * log2(e).
        s = lax.dot_general(q, k, (((1,), (1,)), ((), ())),
                            preferred_element_type=jnp.float32)   # (tq, tk)
        s = s * scale_log2e
        s = mask_fn(ki, s)

        m_new = jnp.maximum(m_prev, s.max(axis=-1, keepdims=True))
        alpha = jnp.exp2(m_prev - m_new)                          # (tq, 1)
        p = jnp.exp2(s - m_new)                                   # (tq, tk) f32
        l_new = alpha * l_prev + p.sum(axis=-1, keepdims=True)
        acc_new = alpha * acc_prev + jnp.dot(                     # bf16 PV, f32 acc
            p.astype(v.dtype), v, preferred_element_type=jnp.float32)
        return m_new, l_new, acc_new

    def no_mask(ki, s):
        return s

    def diag_mask(ki, s):
        # Only built for tiles that actually cross the diagonal: a single
        # iota-difference against a scalar threshold (k_pos <= q_pos).
        diff = (lax.broadcasted_iota(jnp.int32, (tq, tk), 1)
                - lax.broadcasted_iota(jnp.int32, (tq, tk), 0))
        return jnp.where(diff <= qi * tq - ki * tk, s, NEG_INF)

    carry = (jnp.full((tq, 1), NEG_INF, jnp.float32),   # running max (log2 dom.)
             jnp.zeros((tq, 1), jnp.float32),           # running denom
             jnp.zeros((tq, D), jnp.float32))           # running numerator

    if causal:
        # Tiles [0, num_unmasked) are fully below the diagonal (no masking);
        # tiles [num_unmasked, num_valid) cross it; tiles above it are never
        # touched (no compute; K/V are resident so there is no DMA to skip).
        num_unmasked = (qi * tq) // tk
        num_valid = ((qi + 1) * tq + tk - 1) // tk
        carry = lax.fori_loop(0, num_unmasked,
                              lambda ki, c: step(ki, c, no_mask), carry)
        carry = lax.fori_loop(num_unmasked, num_valid,
                              lambda ki, c: step(ki, c, diag_mask), carry)
    else:
        carry = lax.fori_loop(0, num_kv,
                              lambda ki, c: step(ki, c, no_mask), carry)

    _, l, acc = carry
    inv_l = pl.reciprocal(l, approx=True)
    # TODO(synk): D < 128 forces masked partial stores here; packing heads into
    # the lane dim would make the output lane-dense.
    o_ref[0] = (acc * inv_l).astype(o_ref.dtype)


def flash_attention(query, key, value, *, causal=False, block_q=128, block_k=256):
    """query/key/value: (batch, seq_len, n_heads, head_dim) -> same-shaped output."""
    B, S, H, D = query.shape
    scale_log2e = LOG2_E / math.sqrt(D)

    tq = min(block_q, S)
    tk = min(block_k, S)
    assert S % tq == 0 and S % tk == 0, (S, tq, tk)

    def fold(x):  # (B, S, H, D) -> (B*H, S, D)
        return jnp.transpose(x, (0, 2, 1, 3)).reshape(B * H, S, D)

    q, k, v = fold(query), fold(key), fold(value)
    BH = B * H

    kernel = functools.partial(_flash_fwd_kernel, scale_log2e=scale_log2e,
                               causal=causal, tq=tq, tk=tk, kv_len=S)

    # Explicit VMEM budget: resident K+V plus q/out tiles, double-buffered,
    # with headroom; capped at 64 MiB so the same setting is safe on v7x.
    itemsize = jnp.dtype(query.dtype).itemsize
    resident = 2 * (2 * S * D + 2 * tq * D) * itemsize
    vmem_limit = int(min(max(4 * resident, 32 << 20), 64 << 20))

    out = pl.pallas_call(
        kernel,
        out_shape=jax.ShapeDtypeStruct((BH, S, D), query.dtype),
        grid_spec=pltpu.PrefetchScalarGridSpec(
            num_scalar_prefetch=0,
            grid=(BH, S // tq),
            in_specs=[
                pl.BlockSpec((1, tq, D), lambda b, qi: (b, qi, 0)),
                # Whole-sequence K/V blocks: index constant across qi, so they
                # are DMA'd from HBM once per (batch*head) and stay in VMEM.
                pl.BlockSpec((1, S, D), lambda b, qi: (b, 0, 0)),
                pl.BlockSpec((1, S, D), lambda b, qi: (b, 0, 0)),
            ],
            out_specs=pl.BlockSpec((1, tq, D), lambda b, qi: (b, qi, 0)),
        ),
        compiler_params=pltpu.CompilerParams(
            dimension_semantics=("parallel", "parallel"),
            vmem_limit_bytes=vmem_limit),
    )(q, k, v)

    return jnp.transpose(out.reshape(B, H, S, D), (0, 2, 1, 3))


def _reference_attention(q, k, v, causal=False):
    B, S, H, D = q.shape
    qf, kf, vf = (x.astype(jnp.float32) for x in (q, k, v))
    s = jnp.einsum("bqhd,bkhd->bhqk", qf, kf) / math.sqrt(D)
    if causal:
        mask = jnp.tril(jnp.ones((S, S), dtype=bool))
        s = jnp.where(mask[None, None], s, -jnp.inf)
    p = jax.nn.softmax(s, axis=-1)
    return jnp.einsum("bhqk,bkhd->bqhd", p, vf).astype(q.dtype)


if __name__ == "__main__":
    key0 = jax.random.PRNGKey(0)

    def check(B, S, H, D, causal):
        kq, kk, kv = jax.random.split(jax.random.fold_in(key0, S + int(causal)), 3)
        q = jax.random.normal(kq, (B, S, H, D), dtype=jnp.bfloat16)
        k = jax.random.normal(kk, (B, S, H, D), dtype=jnp.bfloat16)
        v = jax.random.normal(kv, (B, S, H, D), dtype=jnp.bfloat16)
        out = jax.jit(functools.partial(flash_attention, causal=causal))(q, k, v)
        out = jax.block_until_ready(out)
        ref = _reference_attention(q, k, v, causal=causal)
        assert out.shape == (B, S, H, D)
        assert jnp.allclose(out.astype(jnp.float32), ref.astype(jnp.float32),
                            atol=3e-2, rtol=3e-2), (B, S, H, D, causal)

    # Module-default path (causal=False, dropout=0.0); bf16 inputs as required
    # by flash_attn_func.
    check(B=2, S=128, H=2, D=32, causal=False)
    # Multi-tile causal path (exercises resident-K/V kv loop + diagonal-only
    # masking + the unmasked/masked loop split).
    check(B=2, S=512, H=2, D=64, causal=True)

    print("KERNEL_OK")
</pallas_src>

<mosaic_0001>
module attributes {stable_mosaic.version = 11 : i64} {
  func.func @_flash_fwd_kernel(%arg0: i32, %arg1: i32, %arg2: memref<1x128x32xbf16, #tpu.memory_space<vmem>>, %arg3: memref<1x128x32xbf16, #tpu.memory_space<vmem>>, %arg4: memref<1x128x32xbf16, #tpu.memory_space<vmem>>, %arg5: memref<1x128x32xbf16, #tpu.memory_space<vmem>>) attributes {dimension_semantics = [#tpu.dimension_semantics<parallel>, #tpu.dimension_semantics<parallel>], iteration_bounds = array<i64: 4, 1>, scalar_prefetch = 0 : i64, scratch_operands = 0 : i64, tpu.core_type = #tpu.core_type<tc>, window_params = [{transform_indices = @transform_0, window_bounds = array<i64: 1, 128, 32>}, {transform_indices = @transform_1, window_bounds = array<i64: 1, 128, 32>}, {transform_indices = @transform_2, window_bounds = array<i64: 1, 128, 32>}, {transform_indices = @transform_3, window_bounds = array<i64: 1, 128, 32>}]} {
    %c0 = arith.constant 0 : index
    %c0_0 = arith.constant 0 : index
    %c0_1 = arith.constant 0 : index
    %0 = vector.load %arg2[%c0, %c0_0, %c0_1] : memref<1x128x32xbf16, #tpu.memory_space<vmem>>, vector<1x128x32xbf16>
    %1 = vector.shape_cast %0 : vector<1x128x32xbf16> to vector<128x32xbf16>
    %cst = arith.constant -1.000000e+30 : f32
    %2 = vector.broadcast %cst : f32 to vector<128x1xf32>
    %cst_2 = arith.constant 0.000000e+00 : f32
    %3 = vector.broadcast %cst_2 : f32 to vector<128x1xf32>
    %cst_3 = arith.constant 0.000000e+00 : f32
    %4 = vector.broadcast %cst_3 : f32 to vector<128x32xf32>
    %c0_i32 = arith.constant 0 : i32
    %c128_i32 = arith.constant 128 : i32
    %5 = arith.muli %c0_i32, %c128_i32 : i32
    %6 = tpu.assume_multiple %5, 128 : i32
    %c0_4 = arith.constant 0 : index
    %7 = arith.index_cast %6 : i32 to index
    %c0_5 = arith.constant 0 : index
    %8 = vector.load %arg3[%c0_4, %7, %c0_5] : memref<1x128x32xbf16, #tpu.memory_space<vmem>>, vector<1x128x32xbf16>
    %9 = vector.shape_cast %8 : vector<1x128x32xbf16> to vector<128x32xbf16>
    %c0_6 = arith.constant 0 : index
    %10 = arith.index_cast %6 : i32 to index
    %c0_7 = arith.constant 0 : index
    %11 = vector.load %arg4[%c0_6, %10, %c0_7] : memref<1x128x32xbf16, #tpu.memory_space<vmem>>, vector<1x128x32xbf16>
    %12 = vector.shape_cast %11 : vector<1x128x32xbf16> to vector<128x32xbf16>
    %cst_8 = arith.constant dense<0.000000e+00> : vector<128x128xf32>
    %13 = tpu.matmul %1, %9, %cst_8 {dimension_numbers = #tpu.dot_dimension_numbers<[1], [1], [0], [0], [0, 0, 1, 0], [], []>} : vector<128x32xbf16>, vector<128x32xbf16>, vector<128x128xf32> -> vector<128x128xf32>
    %cst_9 = arith.constant 0.255034864 : f32
    %14 = vector.broadcast %cst_9 : f32 to vector<128x128xf32>
    %15 = arith.mulf %13, %14 : vector<128x128xf32>
    %cst_10 = arith.constant dense<0xFF800000> : vector<128xf32>
    %16 = vector.multi_reduction <maximumf>, %15, %cst_10 [1] : vector<128x128xf32> to vector<128xf32>
    %17 = vector.shape_cast %16 : vector<128xf32> to vector<128x1xf32>
    %18 = arith.maximumf %2, %17 : vector<128x1xf32>
    %19 = arith.subf %2, %18 : vector<128x1xf32>
    %20 = math.exp2 %19 : vector<128x1xf32>
    %21 = vector.broadcast %18 : vector<128x1xf32> to vector<128x128xf32>
    %22 = arith.subf %15, %21 : vector<128x128xf32>
    %23 = math.exp2 %22 : vector<128x128xf32>
    %24 = arith.mulf %20, %3 : vector<128x1xf32>
    %cst_11 = arith.constant dense<0.000000e+00> : vector<128xf32>
    %25 = vector.multi_reduction <add>, %23, %cst_11 [1] : vector<128x128xf32> to vector<128xf32>
    %26 = vector.shape_cast %25 : vector<128xf32> to vector<128x1xf32>
    %27 = arith.addf %24, %26 : vector<128x1xf32>
    %28 = vector.broadcast %20 : vector<128x1xf32> to vector<128x32xf32>
    %29 = arith.mulf %28, %4 : vector<128x32xf32>
    %30 = arith.truncf %23 : vector<128x128xf32> to vector<128x128xbf16>
    %cst_12 = arith.constant dense<0.000000e+00> : vector<128x32xf32>
    %31 = tpu.matmul %30, %12, %cst_12 {dimension_numbers = #tpu.dot_dimension_numbers<[1], [0], [0], [1], [0, 0, 1, 1], [], []>} : vector<128x128xbf16>, vector<128x32xbf16>, vector<128x32xf32> -> vector<128x32xf32>
    %32 = arith.addf %29, %31 : vector<128x32xf32>
    %c1_i32 = arith.constant 1 : i32
    %33 = tpu.reciprocal %27 {approx = true} : vector<128x1xf32> -> vector<128x1xf32>
    %34 = vector.broadcast %33 : vector<128x1xf32> to vector<128x32xf32>
    %35 = arith.mulf %32, %34 : vector<128x32xf32>
    %36 = arith.truncf %35 : vector<128x32xf32> to vector<128x32xbf16>
    %c0_13 = arith.constant 0 : index
    %c0_14 = arith.constant 0 : index
    %c0_15 = arith.constant 0 : index
    %37 = vector.load %arg5[%c0_13, %c0_14, %c0_15] : memref<1x128x32xbf16, #tpu.memory_space<vmem>>, vector<1x128x32xbf16>
    %38 = vector.shape_cast %37 : vector<1x128x32xbf16> to vector<128x32xbf16>
    %39 = vector.shape_cast %36 : vector<128x32xbf16> to vector<1x128x32xbf16>
    tpu.vector_store %arg5[%c0_13, %c0_14, %c0_15], %39 {strides = array<i32>} : memref<1x128x32xbf16, #tpu.memory_space<vmem>>, vector<1x128x32xbf16>,
    return
  }
  func.func @transform_0(%arg0: i32, %arg1: i32) -> (i32, i32, i32) {
    %c0_i32 = arith.constant 0 : i32
    %c0_i32_0 = arith.constant 0 : i32
    return %arg0, %arg1, %c0_i32 : i32, i32, i32
  }
  func.func @transform_1(%arg0: i32, %arg1: i32) -> (i32, i32, i32) {
    %c0_i32 = arith.constant 0 : i32
    %c0_i32_0 = arith.constant 0 : i32
    %c0_i32_1 = arith.constant 0 : i32
    return %arg0, %c0_i32, %c0_i32_0 : i32, i32, i32
  }
  func.func @transform_2(%arg0: i32, %arg1: i32) -> (i32, i32, i32) {
    %c0_i32 = arith.constant 0 : i32
    %c0_i32_0 = arith.constant 0 : i32
    %c0_i32_1 = arith.constant 0 : i32
    return %arg0, %c0_i32, %c0_i32_0 : i32, i32, i32
  }
  func.func @transform_3(%arg0: i32, %arg1: i32) -> (i32, i32, i32) {
    %c0_i32 = arith.constant 0 : i32
    %c0_i32_0 = arith.constant 0 : i32
    return %arg0, %arg1, %c0_i32 : i32, i32, i32
  }
}

</mosaic_0001>

<bundles_post_ra>
// kernel: flash_attention.1
= control target key start
LH: loop header
LB: loop body
LE: loop exit
PB: predicated region body
PF: predicated region fallthrough
CT: control target
= control target key end

     0   :  { %s1485_s12 = smov 0   ;;  %s1487_s13 = smov 0   ;;  %s1826_s0 = inlined_call_operand.vmem [shape: bf16[4,128,32], index: 0, kind: input, shape index: {}]   ;;  %s1827_s1 = inlined_call_operand.vmem [shape: bf16[4,128,32], index: 1, kind: input, shape index: {}]   ;;  %s1828_s2 = inlined_call_operand.vmem [shape: bf16[4,128,32], index: 2, kind: input, shape index: {}]   ;;  %s1829_s3 = inlined_call_operand.vmem [shape: bf16[4,128,32], index: 3, kind: output, shape index: {}]  }
   0x1   :  { %s1489_s14 = smov 0  }
   0x2 LB: > { %s25_s15 = sadd.s32 1, %s1459_s13  ;;  %p1114_p0 = scmp.ge.s32.totalorder %s1463_s14, 1  ;;  %s1463_s14 = sphi %s1489_s14, %s13_s14   ;;  %s1459_s13 = sphi %s1487_s13, %s1831_s13   ;;  %s1455_s12 = sphi %s1485_s12, %s1830_s12  }
   0x3   : > { %p27_p1 = scmp.ge.s32.totalorder %s25_s15, 4  ;;  %p178_p2 = scmp.lt.s32.totalorder %s1463_s14, 5 }
   0x5   : > { %s1833_s15 = smov (%p27_p1, %s25_s15), 0  ;;  %p179_p3 = pnand %p1114_p0, %p178_p2 }
   0x6   : > { %p221_p4 = scmp.lt.s32.totalorder (!%p179_p3), %s1455_s12, 3  ;;  %vm379_vm0 = vcmask (!%p179_p3), 261120   ;;  %vm982_vm1 = vcmask (!%p179_p3), 257024  }
   0x7   : > { %182 = sbr.rel (%p179_p3) target bundleno = 708 (0x2c4), region = 32 }
   0xe   : > { %s1835_s12 = smov (!%p221_p4, %s1455_s12), 3 }
   0xf   : > { %s1503_s16 = sshll.u32 %s1835_s12, 6 }
  0x10   : > { %s1509_s19 = scalar_lea.vmem %s1827_s1, %s1503_s16  ;;  %s1520_s22 = scalar_lea.vmem %s1826_s0, %s1503_s16 }
  0x11   : > { %v1321_v0 = vld [vmem:[%s1509_s19] sm:$0xff]   ;;  %v1322_v1 = vld [vmem:[%s1509_s19 + $0x8] sm:$0xff]   ;;  %v1323_v3 = vld [vmem:[%s1509_s19 + $0x10] sm:$0xff]   ;;  %s1561_s25 = scalar_lea.vmem %s1828_s2, %s1503_s16  ;;  %s1767_s28 = scalar_lea.vmem %s1829_s3, %s1503_s16 }
  0x12   : > { %1289 = vmatprep.subr.msk.bf16.mxu0 %vm379_vm0, %v1321_v0  ;;  %v405_v2 = vsel %vm379_vm0, %v1321_v0, 0  ;;  %v408_v4 = vsel %vm379_vm0, %v1322_v1, 0  ;;  %v1329_v5 = vld [vmem:[%s1520_s22] sm:$0xff]   ;;  %v411_v6 = vsel %vm379_vm0, %v1323_v3, 0  ;;  %v1324_v7 = vld [vmem:[%s1509_s19 + $0x18] sm:$0xff]   ;;  %v1326_v11 = vld [vmem:[%s1509_s19 + $0x28] sm:$0xff]  }
  0x13   : > { %1226 = vmatpush3.bf16.xpose.msra.mxu0 %v405_v2  ;;  %1241 = vmatprep.mubr.msk.bf16.mxu0 %vm379_vm0, %v1329_v5  ;;  %v414_v8 = vsel %vm379_vm0, %v1324_v7, 0  ;;  %v1325_v9 = vld [vmem:[%s1509_s19 + $0x20] sm:$0xff]   ;;  %v420_v12 = vsel %vm379_vm0, %v1326_v11, 0  ;;  %v1327_v13 = vld [vmem:[%s1509_s19 + $0x30] sm:$0xff]   ;;  %v1328_v15 = vld [vmem:[%s1509_s19 + $0x38] sm:$0xff]  }
  0x14   : > { %1290 = vmatprep.subr.msk.bf16.mxu0 %vm379_vm0, %v1322_v1  ;;  %v417_v10 = vsel %vm379_vm0, %v1325_v9, 0  ;;  %v423_v14 = vsel %vm379_vm0, %v1327_v13, 0  ;;  %v426_v16 = vsel %vm379_vm0, %v1328_v15, 0  ;;  %v1330_v17 = vld [vmem:[%s1520_s22 + $0x8] sm:$0xff]   ;;  %v1331_v18 = vld [vmem:[%s1520_s22 + $0x10] sm:$0xff]   ;;  %v1332_v19 = vld [vmem:[%s1520_s22 + $0x18] sm:$0xff]  }
  0x15   : > { %v1333_v20 = vld [vmem:[%s1520_s22 + $0x20] sm:$0xff]   ;;  %v1334_v21 = vld [vmem:[%s1520_s22 + $0x28] sm:$0xff]   ;;  %v1335_v22 = vld [vmem:[%s1520_s22 + $0x30] sm:$0xff]  }
  0x16   : > { %v1336_v23 = vld [vmem:[%s1520_s22 + $0x38] sm:$0xff]   ;;  %v1337_v24 = vld [vmem:[%s1561_s25] sm:$0xff]   ;;  %v1338_v25 = vld [vmem:[%s1561_s25 + $0x8] sm:$0xff]  }
  0x17   : > { %1257 = vmatprep.subr.bf16.mxu1 %v1337_v24  ;;  %v1339_v26 = vld [vmem:[%s1561_s25 + $0x10] sm:$0xff]   ;;  %v1340_v49 = vld [vmem:[%s1561_s25 + $0x18] sm:$0xff]   ;;  %v1341_v53 = vld [vmem:[%s1561_s25 + $0x20] sm:$0xff]  }
  0x18   : > { %1258 = vmatpush3.bf16.msra.mxu1 %v1337_v24  ;;  %v1342_v59 = vld [vmem:[%s1561_s25 + $0x28] sm:$0xff]   ;;  %v1343_v62 = vld [vmem:[%s1561_s25 + $0x30] sm:$0xff]   ;;  %v1344_v63 = vld [vmem:[%s1561_s25 + $0x38] sm:$0xff]  }
  0x19   : > { %1259 = vmatprep.subr.bf16.mxu1 %v1338_v25 }
  0x1b   : > { %1228 = vmatpush3.bf16.xpose.msra.mxu0 %v408_v4 }
  0x1c   : > { %1291 = vmatprep.subr.msk.bf16.mxu0 %vm379_vm0, %v1323_v3  ;;  %1260 = vmatpush3.bf16.msra.mxu1 %v1338_v25 }
  0x1d   : > { %1261 = vmatprep.subr.bf16.mxu1 %v1339_v26 }
  0x20   : > { %1262 = vmatpush3.bf16.msra.mxu1 %v1339_v26 }
  0x21   : > { %1263 = vmatprep.subr.bf16.mxu1 %v1340_v49 }
  0x23   : > { %1230 = vmatpush3.bf16.xpose.msra.mxu0 %v411_v6 }
  0x24   : > { %1292 = vmatprep.subr.msk.bf16.mxu0 %vm379_vm0, %v1324_v7  ;;  %1264 = vmatpush3.bf16.msra.mxu1 %v1340_v49 }
  0x25   : > { %1265 = vmatprep.subr.bf16.mxu1 %v1341_v53 }
  0x28   : > { %1266 = vmatpush3.bf16.msra.mxu1 %v1341_v53 }
  0x29   : > { %1267 = vmatprep.subr.bf16.mxu1 %v1342_v59 }
  0x2b   : > { %1232 = vmatpush3.bf16.xpose.msra.mxu0 %v414_v8 }
  0x2c   : > { %1293 = vmatprep.subr.msk.bf16.mxu0 %vm379_vm0, %v1325_v9  ;;  %1268 = vmatpush3.bf16.msra.mxu1 %v1342_v59 }
  0x2d   : > { %1269 = vmatprep.subr.bf16.mxu1 %v1343_v62 }
  0x30   : > { %1270 = vmatpush3.bf16.msra.mxu1 %v1343_v62 }
  0x31   : > { %1271 = vmatprep.subr.bf16.mxu1 %v1344_v63 }
  0x33   : > { %1234 = vmatpush3.bf16.xpose.msra.mxu0 %v417_v10 }
  0x34   : > { %1294 = vmatprep.subr.msk.bf16.mxu0 %vm379_vm0, %v1326_v11  ;;  %1272 = vmatpush3.bf16.msra.mxu1 %v1344_v63 }
  0x3b   : > { %1236 = vmatpush3.bf16.xpose.msra.mxu0 %v420_v12 }
  0x3c   : > { %1295 = vmatprep.subr.msk.bf16.mxu0 %vm379_vm0, %v1327_v13 }
  0x43   : > { %1238 = vmatpush3.bf16.xpose.msra.mxu0 %v423_v14 }
  0x44   : > { %1296 = vmatprep.subr.msk.bf16.mxu0 %vm379_vm0, %v1328_v15 }
  0x4b   : > { %1240 = vmatpush3.bf16.xpose.msra.mxu0 %v426_v16 }
  0x52   : > { %1242 = vmatmul.mubr.msk.bf16.vlgmr.msra.gmra.mrb[0].mxu0 %vm379_vm0, %v1330_v17 }
  0x53   : > { %1245 = vmatprep.mubr.msk.bf16.mxu0 %vm379_vm0, %v1331_v18 }
  0x5a   : > { %1246 = vmatmul.mubr.msk.bf16.gmra.mrb[4].mxu0 %vm379_vm0, %v1332_v19 }
  0x5b   : > { %1249 = vmatprep.mubr.msk.bf16.mxu0 %vm379_vm0, %v1333_v20 }
  0x62   : > { %1250 = vmatmul.mubr.msk.bf16.gmra.mrb[8].mxu0 %vm379_vm0, %v1334_v21 }
  0x63   : > { %1253 = vmatprep.mubr.msk.bf16.mxu0 %vm379_vm0, %v1335_v22 }
  0x6a   : > { %1254 = vmatmul.mubr.msk.bf16.gmra.mrb[12].mxu0 %vm379_vm0, %v1336_v23 }
 0x125   : > { %v1243_v27 = vpop.f32.mrb[0].mxu0 }
 0x126   : > { %v1566_v28 = vmul.f32 0.25503486, %v1243_v27  ;;  %v462_v29 = vpop.f32.mrb[1].mxu0 }
 0x127   : > { %v1568_v30 = vmul.f32 0.25503486, %v462_v29  ;;  %v1244_v31 = vpop.f32.mrb[2].mxu0 }
 0x128   : > { %545 = vmax.xlane.f32.xlu1 %v1566_v28  ;;  %v465_v32 = vpop.f32.mrb[3].mxu0  ;;  %v1572_v33 = vmul.f32 0.25503486, %v1244_v31 }
 0x129   : > { %541 = vmax.xlane.f32.xlu0 %v1568_v30  ;;  %v1574_v34 = vmul.f32 0.25503486, %v465_v32 }
 0x12c   : > { %547 = vmax.xlane.f32.xlu1 %v1572_v33 }
 0x12d   : > { %543 = vmax.xlane.f32.xlu0 %v1574_v34  ;;  %v1247_v35 = vpop.f32.mrb[4].mxu0 }
 0x12e   : > { %v478_v36 = vpop.f32.mrb[5].mxu0  ;;  %v1583_v41 = vmul.f32 0.25503486, %v1247_v35 }
 0x12f   : > { %v1578_v37 = vmul.f32 0.25503486, %v478_v36  ;;  %v1248_v38 = vpop.f32.mrb[6].mxu0 }
 0x130   : > { %v481_v39 = vpop.f32.mrb[7].mxu0  ;;  %v1586_v42 = vmul.f32 0.25503486, %v1248_v38 }
 0x131   : > { %v1580_v40 = vmul.f32 0.25503486, %v481_v39  ;;  %549 = vmax.xlane.f32.xlu0 %v1578_v37 }
 0x133   : > { %551 = vmax.xlane.f32.xlu1 %v1580_v40 }
 0x135   : > { %553 = vmax.xlane.f32.xlu0 %v1583_v41  ;;  %v1251_v43 = vpop.f32.mrb[8].mxu0 }
 0x136   : > { %v494_v44 = vpop.f32.mrb[9].mxu0  ;;  %v1596_v50 = vmul.f32 0.25503486, %v1251_v43 }
 0x137   : > { %v1589_v45 = vmul.f32 0.25503486, %v494_v44  ;;  %555 = vmax.xlane.f32.xlu1 %v1586_v42  ;;  %v1252_v46 = vpop.f32.mrb[10].mxu0 }
 0x138   : > { %v497_v47 = vpop.f32.mrb[11].mxu0  ;;  %v1599_v51 = vmul.f32 0.25503486, %v1252_v46 }
 0x139   : > { %v1592_v48 = vmul.f32 0.25503486, %v497_v47  ;;  %557 = vmax.xlane.f32.xlu0 %v1589_v45 }
 0x13b   : > { %559 = vmax.xlane.f32.xlu1 %v1592_v48 }
 0x13d   : > { %561 = vmax.xlane.f32.xlu0 %v1596_v50  ;;  %v1255_v52 = vpop.f32.mrb[12].mxu0 }
 0x13e   : > { %v510_v54 = vpop.f32.mrb[13].mxu0  ;;  %v1610_v60 = vmul.f32 0.25503486, %v1255_v52 }
 0x13f   : > { %v1603_v55 = vmul.f32 0.25503486, %v510_v54  ;;  %563 = vmax.xlane.f32.xlu1 %v1599_v51  ;;  %v1256_v56 = vpop.f32.mrb[14].mxu0 }
 0x140   : > { %v513_v57 = vpop.f32.mrb[15].mxu0  ;;  %v1613_v61 = vmul.f32 0.25503486, %v1256_v56 }
 0x141   : > { %v1606_v58 = vmul.f32 0.25503486, %v513_v57  ;;  %565 = vmax.xlane.f32.xlu0 %v1603_v55 }
 0x143   : > { %567 = vmax.xlane.f32.xlu1 %v1606_v58 }
 0x145   : > { %569 = vmax.xlane.f32.xlu0 %v1610_v60 }
 0x147   : > { %571 = vmax.xlane.f32.xlu1 %v1613_v61 }
 0x1b5   : > { %v1619_v0 = vpop.xlane.xlu1 %545 }
 0x1b6   : > { %v575_v1 = vmax.f32 %v1619_v0, -1e+30  ;;  %v1622_v2 = vpop.xlane.xlu0 %541 }
 0x1b7   : > { %v573_v3 = vmax.f32 %v1622_v2, -1e+30 }
 0x1b8   : > { %v623_v4 = vsub.f32 %v1566_v28, %v575_v1 }
 0x1b9   : > { %v1628_v5 = vpop.xlane.xlu1 %547  ;;  %v621_v6 = vsub.f32 %v1568_v30, %v573_v3 }
 0x1ba   : > { %v576_v7 = vmax.f32 %v1628_v5, -1e+30  ;;  %v1634_v8 = vpop.xlane.xlu0 %543  ;;  %1345 = vpow2.f32 %v623_v4 }
 0x1bb   : > { %v574_v9 = vmax.f32 %v1634_v8, -1e+30  ;;  %1347 = vpow2.f32 %v621_v6 }
 0x1bc   : > { %v624_v10 = vsub.f32 %v1572_v33, %v576_v7 }
 0x1bd   : > { %v622_v11 = vsub.f32 %v1574_v34, %v574_v9 }
 0x1be   : > { %v1643_v12 = vpop.xlane.xlu0 %549  ;;  %1349 = vpow2.f32 %v624_v10 }
 0x1bf   : > { %v577_v13 = vmax.f32 %v1643_v12, -1e+30  ;;  %1351 = vpow2.f32 %v622_v11 }
 0x1c0   : > { %v1646_v14 = vpop.xlane.xlu1 %551 }
 0x1c1   : > { %v578_v15 = vmax.f32 %v1646_v14, -1e+30  ;;  %v625_v17 = vsub.f32 %v1578_v37, %v577_v13  ;;  %v593_v2 = vsub.f32 -1e+30, %v577_v13 }
 0x1c2   : > { %v1649_v16 = vpop.xlane.xlu0 %553 }
 0x1c3   : > { %v626_v18 = vsub.f32 %v1580_v40, %v578_v15  ;;  %v579_v19 = vmax.f32 %v1649_v16, -1e+30 }
 0x1c4   : > { %v1658_v20 = vpop.xlane.xlu1 %555  ;;  %v1346_v21 = vpop.eup %1345 }
 0x1c5   : > { %v627_v22 = vsub.f32 %v1583_v41, %v579_v19  ;;  %v580_v23 = vmax.f32 %v1658_v20, -1e+30  ;;  %1353 = vpow2.f32 %v626_v18  ;;  %673 = vadd.xlane.f32.xlu0 %v1346_v21  ;;  %v1348_v27 = vpop.eup %1347  ;;  %v595_v0 = vsub.f32 -1e+30, %v579_v19 }
 0x1c6   : > { %v1664_v24 = vpop.xlane.xlu0 %557  ;;  %1355 = vpow2.f32 %v625_v17 }
 0x1c7   : > { %v628_v25 = vsub.f32 %v1586_v42, %v580_v23  ;;  %v581_v26 = vmax.f32 %v1664_v24, -1e+30  ;;  %1357 = vpow2.f32 %v627_v22 }
 0x1c8   : > { %v1670_v28 = vpop.xlane.xlu1 %559  ;;  %v1350_v29 = vpop.eup %1349 }
 0x1c9   : > { %v629_v30 = vsub.f32 %v1589_v45, %v581_v26  ;;  %v582_v31 = vmax.f32 %v1670_v28, -1e+30  ;;  %1359 = vpow2.f32 %v628_v25  ;;  %669 = vadd.xlane.f32.xlu0 %v1348_v27  ;;  %675 = vadd.xlane.f32.xlu1 %v1350_v29  ;;  %v1352_v33 = vpop.eup %1351  ;;  %v718_v40 = vpack.c.bf16 %v1350_v29, %v1346_v21 }
 0x1ca   : > { %v1676_v32 = vpop.xlane.xlu0 %561  ;;  %v717_v36 = vpack.c.bf16 %v1352_v33, %v1348_v27  ;;  %v591_v25 = vsub.f32 -1e+30, %v575_v1  ;;  %v589_v27 = vsub.f32 -1e+30, %v573_v3  ;;  %v596_v3 = vsub.f32 -1e+30, %v580_v23 }
 0x1cb   : > { %v630_v34 = vsub.f32 %v1592_v48, %v582_v31  ;;  %v583_v35 = vmax.f32 %v1676_v32, -1e+30  ;;  %1361 = vpow2.f32 %v629_v30  ;;  %v592_v30 = vsub.f32 -1e+30, %v576_v7 }
 0x1cc   : > { %v1682_v37 = vpop.xlane.xlu1 %563  ;;  %1273 = vmatprep.mubr.bf16.mxu1 %v717_v36  ;;  %v594_v7 = vsub.f32 -1e+30, %v578_v15  ;;  %v597_v16 = vsub.f32 -1e+30, %v581_v26  ;;  %v598_v12 = vsub.f32 -1e+30, %v582_v31 }
 0x1cd   : > { %v631_v38 = vsub.f32 %v1596_v50, %v583_v35  ;;  %v584_v39 = vmax.f32 %v1682_v37, -1e+30  ;;  %1363 = vpow2.f32 %v630_v34  ;;  %671 = vadd.xlane.f32.xlu1 %v1352_v33  ;;  %1274 = vmatmul.mubr.bf16.vlgmr.msra.gmra.mrb[0].mxu1 %v718_v40  ;;  %v590_v33 = vsub.f32 -1e+30, %v574_v9 }
 0x1ce   : > { %v1688_v41 = vpop.xlane.xlu0 %565  ;;  %v599_v20 = vsub.f32 -1e+30, %v583_v35 }
 0x1cf   : > { %v632_v42 = vsub.f32 %v1599_v51, %v584_v39  ;;  %v585_v43 = vmax.f32 %v1688_v41, -1e+30  ;;  %v1354_v44 = vpop.eup %1353  ;;  %1365 = vpow2.f32 %v631_v38  ;;  %v600_v23 = vsub.f32 -1e+30, %v584_v39 }
 0x1d0   : > { %v1694_v45 = vpop.xlane.xlu1 %567  ;;  %v1356_v46 = vpop.eup %1355 }
 0x1d1   : > { %v633_v47 = vsub.f32 %v1603_v55, %v585_v43  ;;  %v586_v48 = vmax.f32 %v1694_v45, -1e+30  ;;  %v1358_v49 = vpop.eup %1357  ;;  %1367 = vpow2.f32 %v632_v42  ;;  %v719_v50 = vpack.c.bf16 %v1354_v44, %v1356_v46 }
 0x1d2   : > { %v1700_v52 = vpop.xlane.xlu0 %569  ;;  %681 = vadd.xlane.f32.xlu0 %v1358_v49  ;;  %v601_v37 = vsub.f32 -1e+30, %v585_v43 }
 0x1d3   : > { %v634_v51 = vsub.f32 %v1606_v58, %v586_v48  ;;  %v587_v53 = vmax.f32 %v1700_v52, -1e+30  ;;  %v1360_v54 = vpop.eup %1359  ;;  %1277 = vmatprep.mubr.bf16.mxu1 %v719_v50  ;;  %1369 = vpow2.f32 %v633_v47 }
 0x1d4   : > { %v1706_v56 = vpop.xlane.xlu1 %571  ;;  %683 = vadd.xlane.f32.xlu1 %v1360_v54  ;;  %v720_v59 = vpack.c.bf16 %v1360_v54, %v1358_v49  ;;  %v602_v54 = vsub.f32 -1e+30, %v586_v48 }
 0x1d5   : > { %v635_v55 = vsub.f32 %v1610_v60, %v587_v53  ;;  %v588_v57 = vmax.f32 %v1706_v56, -1e+30  ;;  %1371 = vpow2.f32 %v634_v51  ;;  %v1362_v62 = vpop.eup %1361  ;;  %v603_v49 = vsub.f32 -1e+30, %v587_v53 }
 0x1d6   : > { %677 = vadd.xlane.f32.xlu0 %v1356_v46  ;;  %1278 = vmatmul.mubr.bf16.gmra.mrb[4].mxu1 %v720_v59 }
 0x1d7   : > { %v636_v58 = vsub.f32 %v1613_v61, %v588_v57  ;;  %v1364_v63 = vpop.eup %1363  ;;  %1373 = vpow2.f32 %v635_v55  ;;  %v604_v59 = vsub.f32 -1e+30, %v588_v57 }
 0x1d8   : > { %679 = vadd.xlane.f32.xlu1 %v1354_v44  ;;  %v721_v4 = vpack.c.bf16 %v1364_v63, %v1362_v62 }
 0x1d9   : > { %v1366_v6 = vpop.eup %1365  ;;  %1375 = vpow2.f32 %v636_v58 }
 0x1da   : > { %1281 = vmatprep.mubr.bf16.mxu1 %v721_v4  ;;  %689 = vadd.xlane.f32.xlu0 %v1366_v6  ;;  %1377 = vpow2.f32 %v591_v25 }
 0x1db   : > { %v1368_v60 = vpop.eup %1367  ;;  %1379 = vpow2.f32 %v589_v27 }
 0x1dc   : > { %691 = vadd.xlane.f32.xlu1 %v1368_v60  ;;  %v722_v10 = vpack.c.bf16 %v1368_v60, %v1366_v6  ;;  %1381 = vpow2.f32 %v592_v30 }
 0x1dd   : > { %v1370_v11 = vpop.eup %1369  ;;  %1383 = vpow2.f32 %v590_v33 }
 0x1de   : > { %685 = vadd.xlane.f32.xlu0 %v1362_v62  ;;  %1282 = vmatmul.mubr.bf16.gmra.mrb[8].mxu1 %v722_v10  ;;  %1385 = vpow2.f32 %v595_v0 }
 0x1df   : > { %v1372_v17 = vpop.eup %1371  ;;  %1387 = vpow2.f32 %v593_v2 }
 0x1e0   : > { %687 = vadd.xlane.f32.xlu1 %v1364_v63  ;;  %v723_v18 = vpack.c.bf16 %v1372_v17, %v1370_v11  ;;  %1389 = vpow2.f32 %v596_v3 }
 0x1e1   : > { %v1374_v61 = vpop.eup %1373  ;;  %1391 = vpow2.f32 %v594_v7 }
 0x1e2   : > { %693 = vadd.xlane.f32.xlu0 %v1370_v11  ;;  %1285 = vmatprep.mubr.bf16.mxu1 %v723_v18  ;;  %1393 = vpow2.f32 %v597_v16 }
 0x1e3   : > { %v1376_v21 = vpop.eup %1375  ;;  %1395 = vpow2.f32 %v598_v12 }
 0x1e4   : > { %695 = vadd.xlane.f32.xlu1 %v1372_v17  ;;  %v724_v22 = vpack.c.bf16 %v1376_v21, %v1374_v61  ;;  %v1378_v9 = vpop.eup %1377  ;;  %1397 = vpow2.f32 %v599_v20 }
 0x1e5   : > { %v1380_v38 = vpop.eup %1379  ;;  %v655_v14 = vmul.f32 0.0, %v1378_v9  ;;  %1399 = vpow2.f32 %v600_v23 }
 0x1e6   : > { %697 = vadd.xlane.f32.xlu0 %v1374_v61  ;;  %1286 = vmatmul.mubr.bf16.gmra.mrb[12].mxu1 %v724_v22  ;;  %v1382_v19 = vpop.eup %1381  ;;  %v653_v40 = vmul.f32 0.0, %v1380_v38 }
 0x1e7   : > { %v1384_v13 = vpop.eup %1383  ;;  %v656_v44 = vmul.f32 0.0, %v1382_v19 }
 0x1e8   : > { %699 = vadd.xlane.f32.xlu1 %v1376_v21  ;;  %v654_v46 = vmul.f32 0.0, %v1384_v13  ;;  %v1386_v47 = vpop.eup %1385 }
 0x1e9   : > { %v1388_v35 = vpop.eup %1387  ;;  %v1745_v55 = vmul.f32 0.0, %v1386_v47 }
 0x1ea   : > { %v1390_v39 = vpop.eup %1389  ;;  %v1749_v62 = vmul.f32 0.0, %v1388_v35 }
 0x1eb   : > { %v1392_v51 = vpop.eup %1391  ;;  %v1752_v43 = vmul.f32 0.0, %v1390_v39 }
 0x1ec   : > { %v1394_v52 = vpop.eup %1393  ;;  %v1755_v58 = vmul.f32 0.0, %v1392_v51 }
 0x1ed   : > { %v1396_v48 = vpop.eup %1395  ;;  %v1759_v18 = vmul.f32 0.0, %v1394_v52 }
 0x1ee   : > { %v1398_v56 = vpop.eup %1397  ;;  %v1773_v9 = vmul.f32 0.0, %v1396_v48 }
 0x1ef   : > { %v1400_v60 = vpop.eup %1399  ;;  %v1761_v25 = vmul.f32 0.0, %v1398_v56 }
 0x1f0   : > { %v1770_v3 = vmul.f32 0.0, %v1400_v60 }
 0x252   : > { %v674_v29 = vpop.xlane.xlu0 %673 }
 0x253   : > { %v703_v42 = vadd.f32 %v674_v29, %v655_v14 }
 0x255   : > { %1401 = vrcp.f32 %v703_v42 }
 0x256   : > { %v676_v34 = vpop.xlane.xlu1 %675  ;;  %v670_v36 = vpop.xlane.xlu0 %669 }
 0x257   : > { %v701_v26 = vadd.f32 %v670_v36, %v653_v40  ;;  %v704_v28 = vadd.f32 %v676_v34, %v656_v44 }
 0x259   : > { %1403 = vrcp.f32 %v701_v26 }
 0x25a   : > { %v672_v1 = vpop.xlane.xlu1 %671  ;;  %1405 = vrcp.f32 %v704_v28 }
 0x25b   : > { %v702_v31 = vadd.f32 %v672_v1, %v654_v46 }
 0x25d   : > { %1407 = vrcp.f32 %v702_v31 }
 0x25e   : > { %1409 = vpow2.f32 %v601_v37 }
 0x25f   : > { %v682_v5 = vpop.xlane.xlu0 %681  ;;  %1411 = vpow2.f32 %v603_v49  ;;  %v1402_v17 = vpop.eup %1401 }
 0x260   : > { %v707_v41 = vadd.f32 %v682_v5, %v1745_v55  ;;  %1413 = vpow2.f32 %v602_v54 }
 0x261   : > { %v684_v8 = vpop.xlane.xlu1 %683  ;;  %1415 = vpow2.f32 %v604_v59 }
 0x262   : > { %v708_v63 = vadd.f32 %v684_v8, %v1752_v43  ;;  %1417 = vrcp.f32 %v707_v41 }
 0x263   : > { %v678_v15 = vpop.xlane.xlu0 %677  ;;  %v1404_v22 = vpop.eup %1403 }
 0x264   : > { %v705_v53 = vadd.f32 %v678_v15, %v1749_v62  ;;  %v1406_v33 = vpop.eup %1405 }
 0x265   : > { %v680_v24 = vpop.xlane.xlu1 %679 }
 0x266   : > { %v706_v57 = vadd.f32 %v680_v24, %v1755_v58  ;;  %1419 = vrcp.f32 %v705_v53 }
 0x267   : > { %v690_v32 = vpop.xlane.xlu0 %689  ;;  %1421 = vrcp.f32 %v708_v63  ;;  %v1408_v1 = vpop.eup %1407 }
 0x268   : > { %1423 = vrcp.f32 %v706_v57  ;;  %v711_v2 = vadd.f32 %v690_v32, %v1761_v25  ;;  %v1410_v12 = vpop.eup %1409 }
 0x269   : > { %v692_v50 = vpop.xlane.xlu1 %691  ;;  %v665_v37 = vmul.f32 0.0, %v1410_v12 }
 0x26a   : > { %v712_v13 = vadd.f32 %v692_v50, %v1770_v3  ;;  %1425 = vrcp.f32 %v711_v2 }
 0x26b   : > { %v686_v45 = vpop.xlane.xlu0 %685 }
 0x26c   : > { %v709_v8 = vadd.f32 %v686_v45, %v1759_v18 }
 0x26d   : > { %v688_v4 = vpop.xlane.xlu1 %687 }
 0x26e   : > { %v710_v15 = vadd.f32 %v688_v4, %v1773_v9  ;;  %1427 = vrcp.f32 %v709_v8 }
 0x26f   : > { %v694_v34 = vpop.xlane.xlu0 %693  ;;  %1429 = vrcp.f32 %v712_v13 }
 0x270   : > { %1431 = vrcp.f32 %v710_v15 }
 0x271   : > { %v696_v38 = vpop.xlane.xlu1 %695 }
 0x273   : > { %v698_v24 = vpop.xlane.xlu0 %697 }
 0x275   : > { %v700_v39 = vpop.xlane.xlu1 %699 }
 0x2a0   : > { %v1275_v6 = vpop.f32.mrb[0].mxu1 }
 0x2a1   : > { %v872_v10 = vadd.f32 %v1275_v6, %v655_v14  ;;  %v807_v11 = vpop.f32.mrb[1].mxu1  ;;  %v1412_v14 = vpop.eup %1411 }
 0x2a2   : > { %v870_v61 = vadd.f32 %v807_v11, %v653_v40  ;;  %v1276_v21 = vpop.f32.mrb[2].mxu1  ;;  %v1414_v40 = vpop.eup %1413  ;;  %v667_v31 = vmul.f32 0.0, %v1412_v14 }
 0x2a3   : > { %v904_v27 = vmul.f32 %v1402_v17, %v872_v10  ;;  %v873_v29 = vadd.f32 %v1276_v21, %v656_v44  ;;  %v810_v30 = vpop.f32.mrb[3].mxu1  ;;  %v1416_v44 = vpop.eup %1415  ;;  %v666_v45 = vmul.f32 0.0, %v1414_v40 }
 0x2a4   : > { %v902_v36 = vmul.f32 %v1404_v22, %v870_v61  ;;  %v871_v0 = vadd.f32 %v810_v30, %v654_v46  ;;  %v1418_v28 = vpop.eup %1417  ;;  %v715_v59 = vadd.f32 %v698_v24, %v667_v31 }
 0x2a5   : > { %v1179_v5 = vpack.c.bf16 %v904_v27, %v904_v27  ;;  %v905_v7 = vmul.f32 %v1406_v33, %v873_v29  ;;  %v1420_v35 = vpop.eup %1419 }
 0x2a6   : > { %v1177_v16 = vpack.c.bf16 %v902_v36, %v902_v36  ;;  %v903_v19 = vmul.f32 %v1408_v1, %v871_v0  ;;  %v1422_v54 = vpop.eup %1421  ;;  %1433 = vrcp.f32 %v715_v59 }
 0x2a7   : > { %985 = vst.msk [vmem:[%s1767_s28 + $0x8] sm:$0xf] %vm982_vm1, %v1179_v5  ;;  %v1180_v20 = vpack.c.bf16 %v905_v7, %v905_v7  ;;  %v1424_v53 = vpop.eup %1423 }
 0x2a8   : > { %983 = vst.msk [vmem:[%s1767_s28] sm:$0xf] %vm982_vm1, %v1177_v16  ;;  %v1178_v23 = vpack.c.bf16 %v903_v19, %v903_v19  ;;  %v1426_v17 = vpop.eup %1425 }
 0x2a9   : > { %986 = vst.msk [vmem:[%s1767_s28 + $0xc] sm:$0xf] %vm982_vm1, %v1180_v20  ;;  %v1279_v42 = vpop.f32.mrb[4].mxu1  ;;  %v1428_v22 = vpop.eup %1427 }
 0x2aa   : > { %984 = vst.msk [vmem:[%s1767_s28 + $0x4] sm:$0xf] %vm982_vm1, %v1178_v23  ;;  %v876_v26 = vadd.f32 %v1279_v42, %v1745_v55  ;;  %v823_v46 = vpop.f32.mrb[5].mxu1  ;;  %v668_v55 = vmul.f32 0.0, %v1416_v44  ;;  %v1430_v33 = vpop.eup %1429 }
 0x2ab   : > { %v874_v47 = vadd.f32 %v823_v46, %v1749_v62  ;;  %v1280_v32 = vpop.f32.mrb[6].mxu1  ;;  %v713_v62 = vadd.f32 %v694_v34, %v665_v37  ;;  %v1432_v36 = vpop.eup %1431 }
 0x2ac   : > { %v908_v49 = vmul.f32 %v1418_v28, %v876_v26  ;;  %v877_v50 = vadd.f32 %v1280_v32, %v1752_v43  ;;  %v826_v51 = vpop.f32.mrb[7].mxu1  ;;  %v716_v56 = vadd.f32 %v700_v39, %v668_v55  ;;  %v714_v43 = vadd.f32 %v696_v38, %v666_v45 }
 0x2ad   : > { %v906_v41 = vmul.f32 %v1420_v35, %v874_v47  ;;  %v875_v52 = vadd.f32 %v826_v51, %v1755_v58  ;;  %1435 = vrcp.f32 %v713_v62 }
 0x2ae   : > { %v1183_v48 = vpack.c.bf16 %v908_v49, %v908_v49  ;;  %v909_v63 = vmul.f32 %v1422_v54, %v877_v50  ;;  %1437 = vrcp.f32 %v716_v56 }
 0x2af   : > { %v1181_v57 = vpack.c.bf16 %v906_v41, %v906_v41  ;;  %v907_v4 = vmul.f32 %v1424_v53, %v875_v52  ;;  %1439 = vrcp.f32 %v714_v43 }
 0x2b0   : > { %989 = vst.msk [vmem:[%s1767_s28 + $0x18] sm:$0xf] %vm982_vm1, %v1183_v48  ;;  %v1184_v6 = vpack.c.bf16 %v909_v63, %v909_v63  ;;  %v1434_v16 = vpop.eup %1433 }
 0x2b1   : > { %987 = vst.msk [vmem:[%s1767_s28 + $0x10] sm:$0xf] %vm982_vm1, %v1181_v57  ;;  %v1182_v60 = vpack.c.bf16 %v907_v4, %v907_v4  ;;  %v1283_v10 = vpop.f32.mrb[8].mxu1 }
 0x2b2   : > { %990 = vst.msk [vmem:[%s1767_s28 + $0x1c] sm:$0xf] %vm982_vm1, %v1184_v6  ;;  %v880_v58 = vadd.f32 %v1283_v10, %v1761_v25  ;;  %v839_v11 = vpop.f32.mrb[9].mxu1 }
 0x2b3   : > { %988 = vst.msk [vmem:[%s1767_s28 + $0x14] sm:$0xf] %vm982_vm1, %v1182_v60  ;;  %v878_v61 = vadd.f32 %v839_v11, %v1759_v18  ;;  %v1284_v21 = vpop.f32.mrb[10].mxu1 }
 0x2b4   : > { %v912_v27 = vmul.f32 %v1426_v17, %v880_v58  ;;  %v881_v29 = vadd.f32 %v1284_v21, %v1770_v3  ;;  %v842_v30 = vpop.f32.mrb[11].mxu1 }
 0x2b5   : > { %v910_v34 = vmul.f32 %v1428_v22, %v878_v61  ;;  %v879_v25 = vadd.f32 %v842_v30, %v1773_v9 }
 0x2b6   : > { %v1187_v0 = vpack.c.bf16 %v912_v27, %v912_v27  ;;  %v913_v1 = vmul.f32 %v1430_v33, %v881_v29 }
 0x2b7   : > { %v1185_v2 = vpack.c.bf16 %v910_v34, %v910_v34  ;;  %v911_v5 = vmul.f32 %v1432_v36, %v879_v25  ;;  %v1436_v12 = vpop.eup %1435 }
 0x2b8   : > { %993 = vst.msk [vmem:[%s1767_s28 + $0x28] sm:$0xf] %vm982_vm1, %v1187_v0  ;;  %v1188_v18 = vpack.c.bf16 %v913_v1, %v913_v1  ;;  %v1438_v15 = vpop.eup %1437 }
 0x2b9   : > { %991 = vst.msk [vmem:[%s1767_s28 + $0x20] sm:$0xf] %vm982_vm1, %v1185_v2  ;;  %v1186_v7 = vpack.c.bf16 %v911_v5, %v911_v5  ;;  %v1287_v8 = vpop.f32.mrb[12].mxu1  ;;  %v1440_v42 = vpop.eup %1439 }
 0x2ba   : > { %994 = vst.msk [vmem:[%s1767_s28 + $0x2c] sm:$0xf] %vm982_vm1, %v1188_v18  ;;  %v884_v3 = vadd.f32 %v1287_v8, %v667_v31  ;;  %v855_v38 = vpop.f32.mrb[13].mxu1 }
 0x2bb   : > { %992 = vst.msk [vmem:[%s1767_s28 + $0x24] sm:$0xf] %vm982_vm1, %v1186_v7  ;;  %v882_v9 = vadd.f32 %v855_v38, %v665_v37  ;;  %v1288_v19 = vpop.f32.mrb[14].mxu1 }
 0x2bc   : > { %v916_v13 = vmul.f32 %v1434_v16, %v884_v3  ;;  %v885_v20 = vadd.f32 %v1288_v19, %v668_v55  ;;  %v858_v14 = vpop.f32.mrb[15].mxu1 }
 0x2bd   : > { %v914_v23 = vmul.f32 %v1436_v12, %v882_v9  ;;  %v883_v40 = vadd.f32 %v858_v14, %v666_v45 }
 0x2be   : > { %v1191_v44 = vpack.c.bf16 %v916_v13, %v916_v13  ;;  %v917_v24 = vmul.f32 %v1438_v15, %v885_v20 }
 0x2bf   : > { %v1189_v26 = vpack.c.bf16 %v914_v23, %v914_v23  ;;  %v915_v46 = vmul.f32 %v1440_v42, %v883_v40 }
 0x2c0   : > { %997 = vst.msk [vmem:[%s1767_s28 + $0x38] sm:$0xf] %vm982_vm1, %v1191_v44  ;;  %v1192_v28 = vpack.c.bf16 %v917_v24, %v917_v24 }
 0x2c1   : > { %995 = vst.msk [vmem:[%s1767_s28 + $0x30] sm:$0xf] %vm982_vm1, %v1189_v26  ;;  %v1190_v31 = vpack.c.bf16 %v915_v46, %v915_v46 }
 0x2c2   : > { %998 = vst.msk [vmem:[%s1767_s28 + $0x3c] sm:$0xf] %vm982_vm1, %v1192_v28 }
 0x2c3   : > { %996 = vst.msk [vmem:[%s1767_s28 + $0x34] sm:$0xf] %vm982_vm1, %v1190_v31 }
 0x2c4 PF: > { %s13_s14 = sadd.s32 1, %s1463_s14   ;;  %s1830_s12 = smov %s1459_s13 }
 0x2c5   : > { %p10_p5 = scmp.ge.s32.totalorder %s13_s14, 6   ;;  %s1831_s13 = smov %s1833_s15 }
 0x2c7   :  { %12 = sbr.rel (!%p10_p5) target bundleno = 2 (0x2), region = 68 }

</bundles_post_ra>
